<compile_context>
chip_gen: v7x
topology: tpu7x:2x2x1
jax: 0.10.0
libtpu: 0.0.40
codegen_flags: <defaults>
</compile_context>

<pallas_src>
import functools

import jax
import jax.numpy as jnp
from jax.experimental import pallas as pl
from jax.experimental.pallas import tpu as pltpu

STATE_DIM = 15
HIDDEN = 64
WIDTH = 2 * HIDDEN        # 128: fused actor+critic hidden width
F_PAD = 128               # state features padded to a full lane group
OUT_PAD = 128             # fused layer-3 / output lane width
ENT_LANE = OUT_PAD - 2    # entropy lane in the combined output
VAL_LANE = OUT_PAD - 1    # critic-value lane in the fused layer-3 output


def _round_up(x, m):
    return (x + m - 1) // m * m


# ----------------------------------------------------------------------------
# Kernel
# ----------------------------------------------------------------------------
def _fused_actor_critic_kernel(action_dim,
                               x_ref, w1_ref, b1_ref, w2_ref, b2_ref,
                               w3_ref, b3_ref,
                               pev_ref, logp_ref):
    x = x_ref[...]                                            # [T, 128] f32

    h = jnp.tanh(jnp.dot(x, w1_ref[...],
                         preferred_element_type=jnp.float32) + b1_ref[...])
    h = jnp.tanh(jnp.dot(h, w2_ref[...],
                         preferred_element_type=jnp.float32) + b2_ref[...])
    y = jnp.dot(h, w3_ref[...],
                preferred_element_type=jnp.float32) + b3_ref[...]  # [T, 128]

    col = jax.lax.broadcasted_iota(jnp.int32, y.shape, 1)
    valid = col < action_dim                                  # actor-logit lanes

    # Numerically stable softmax / log-softmax over the A valid lanes only.
    masked = jnp.where(valid, y, -jnp.inf)
    m = jnp.max(masked, axis=-1, keepdims=True)
    e = jnp.where(valid, jnp.exp(y - m), 0.0)
    z = jnp.sum(e, axis=-1, keepdims=True)
    probs = e * pl.reciprocal(z, approx=False)                # zeros on pad lanes
    logp = jnp.where(valid, (y - m) - jnp.log(z), 0.0)
    ent = -jnp.sum(probs * logp, axis=-1, keepdims=True)      # [T, 1]

    # Lane-dense combined output: probs in lanes 0:A, entropy @126, value @127
    # (value is already sitting in lane 127 of y from the packed layer-3).
    out1 = jnp.where(col == VAL_LANE, y,
                     jnp.where(col == ENT_LANE, ent, probs))
    pev_ref[...] = out1
    logp_ref[...] = logp


# ----------------------------------------------------------------------------
# Wrapper
# ----------------------------------------------------------------------------
def actor_critic_forward(state, packed, action_dim, tile_b=1024):
    """Fused actor+critic forward.

    state:  [B, 15] float32
    packed: dict of fused weights from pack_params()
    returns: probs [B, A], log_probs [B, A], entropy [B], value [B, 1]
    """
    B, F = state.shape
    assert F == STATE_DIM
    assert action_dim + 2 <= OUT_PAD

    tile_b = min(tile_b, _round_up(B, 8))
    B_pad = _round_up(B, tile_b)
    x = jnp.pad(state.astype(jnp.float32),
                ((0, B_pad - B), (0, F_PAD - F)))              # [B_pad, 128]

    grid = (B_pad // tile_b,)
    row_spec = pl.BlockSpec((tile_b, F_PAD), lambda i: (i, 0))
    out_spec = pl.BlockSpec((tile_b, OUT_PAD), lambda i: (i, 0))

    def w_spec(shape):
        # Weights/biases: same block every grid step -> stay VMEM resident.
        return pl.BlockSpec(shape, lambda i: (0, 0))

    kernel = functools.partial(_fused_actor_critic_kernel, action_dim)

    pev, logp = pl.pallas_call(
        kernel,
        grid=grid,
        in_specs=[
            row_spec,
            w_spec((F_PAD, WIDTH)), w_spec((1, WIDTH)),
            w_spec((WIDTH, WIDTH)), w_spec((1, WIDTH)),
            w_spec((WIDTH, OUT_PAD)), w_spec((1, OUT_PAD)),
        ],
        out_specs=(out_spec, out_spec),
        out_shape=(
            jax.ShapeDtypeStruct((B_pad, OUT_PAD), jnp.float32),  # probs|ent|val
            jax.ShapeDtypeStruct((B_pad, OUT_PAD), jnp.float32),  # log-probs
        ),
        compiler_params=pltpu.CompilerParams(
            dimension_semantics=("parallel",)),
    )(x, packed["w1"], packed["b1"], packed["w2"], packed["b2"],
      packed["w3"], packed["b3"])

    probs = pev[:B, :action_dim]
    entropy = pev[:B, ENT_LANE]
    value = pev[:B, VAL_LANE:VAL_LANE + 1]
    log_probs = logp[:B, :action_dim]
    return probs, log_probs, entropy, value


def act(state, packed, action_dim, rng_key, tile_b=1024):
    """Mirror of ActorCriticEasy.act (sampling stays in JAX glue)."""
    _probs, logp, _ent, value = actor_critic_forward(state, packed, action_dim,
                                                     tile_b=tile_b)
    action = jax.random.categorical(rng_key, logp, axis=-1)
    action_logprob = jnp.take_along_axis(logp, action[:, None], axis=-1)[:, 0]
    return action, action_logprob, value


def evaluate(state, action, packed, action_dim, tile_b=1024):
    """Mirror of ActorCriticEasy.evaluate."""
    _probs, logp, ent, value = actor_critic_forward(state, packed, action_dim,
                                                    tile_b=tile_b)
    action_logprobs = jnp.take_along_axis(logp, action[:, None], axis=-1)[:, 0]
    return action_logprobs, value, ent


# ----------------------------------------------------------------------------
# Parameter init / packing
# ----------------------------------------------------------------------------
def _linear_params(key, fan_in, fan_out):
    """PyTorch nn.Linear default init, stored as [in, out]."""
    kw, kb = jax.random.split(key)
    bound = 1.0 / (fan_in ** 0.5)
    w = jax.random.uniform(kw, (fan_in, fan_out), jnp.float32, -bound, bound)
    b = jax.random.uniform(kb, (1, fan_out), jnp.float32, -bound, bound)
    return w, b


def init_params(key, action_dim, in_dim=STATE_DIM, hidden=HIDDEN):
    keys = jax.random.split(key, 6)
    aw1, ab1 = _linear_params(keys[0], in_dim, hidden)
    aw2, ab2 = _linear_params(keys[1], hidden, hidden)
    aw3, ab3 = _linear_params(keys[2], hidden, action_dim)
    cw1, cb1 = _linear_params(keys[3], in_dim, hidden)
    cw2, cb2 = _linear_params(keys[4], hidden, hidden)
    cw3, cb3 = _linear_params(keys[5], hidden, 1)
    return dict(aw1=aw1, ab1=ab1, aw2=aw2, ab2=ab2, aw3=aw3, ab3=ab3,
                cw1=cw1, cb1=cb1, cw2=cw2, cb2=cb2, cw3=cw3, cb3=cb3)


def pack_params(params, action_dim):
    """Pack actor+critic weights into fused 128-wide block matrices (once)."""
    F = params["aw1"].shape[0]
    H = params["aw2"].shape[0]
    A = action_dim

    w1 = jnp.zeros((F_PAD, WIDTH), jnp.float32)
    w1 = w1.at[:F, :H].set(params["aw1"])
    w1 = w1.at[:F, H:].set(params["cw1"])
    b1 = jnp.concatenate([params["ab1"], params["cb1"]], axis=1)      # [1, 128]

    w2 = jnp.zeros((WIDTH, WIDTH), jnp.float32)
    w2 = w2.at[:H, :H].set(params["aw2"])
    w2 = w2.at[H:, H:].set(params["cw2"])
    b2 = jnp.concatenate([params["ab2"], params["cb2"]], axis=1)      # [1, 128]

    w3 = jnp.zeros((WIDTH, OUT_PAD), jnp.float32)
    w3 = w3.at[:H, :A].set(params["aw3"])
    w3 = w3.at[H:, VAL_LANE].set(params["cw3"][:, 0])
    b3 = jnp.zeros((1, OUT_PAD), jnp.float32)
    b3 = b3.at[:, :A].set(params["ab3"][0])
    b3 = b3.at[:, VAL_LANE].set(params["cb3"][0, 0])

    return dict(w1=w1, b1=b1, w2=w2, b2=b2, w3=w3, b3=b3)


# ----------------------------------------------------------------------------
# Pure-JAX reference (unfused) for correctness checking
# ----------------------------------------------------------------------------
def _reference_forward(state, params):
    h = jnp.tanh(state @ params["aw1"] + params["ab1"])
    h = jnp.tanh(h @ params["aw2"] + params["ab2"])
    logits = h @ params["aw3"] + params["ab3"]
    probs = jax.nn.softmax(logits, axis=-1)
    logp = jax.nn.log_softmax(logits, axis=-1)
    ent = -jnp.sum(probs * logp, axis=-1)
    g = jnp.tanh(state @ params["cw1"] + params["cb1"])
    g = jnp.tanh(g @ params["cw2"] + params["cb2"])
    val = g @ params["cw3"] + params["cb3"]
    return probs, logp, ent, val


if __name__ == "__main__":
    key = jax.random.PRNGKey(0)
    k_params, k_state, k_state2, k_sample = jax.random.split(key, 4)

    ACTION_DIM = 6
    BATCH = 8

    params = init_params(k_params, ACTION_DIM)
    packed = pack_params(params, ACTION_DIM)

    # --- small batch (single tile) ---
    state = jax.random.normal(k_state, (BATCH, STATE_DIM), jnp.float32)
    probs, logp, ent, value = actor_critic_forward(state, packed, ACTION_DIM)
    jax.block_until_ready((probs, logp, ent, value))

    r_probs, r_logp, r_ent, r_val = _reference_forward(state, params)
    assert jnp.allclose(probs, r_probs, atol=1e-5, rtol=1e-5)
    assert jnp.allclose(logp, r_logp, atol=1e-5, rtol=1e-5)
    assert jnp.allclose(ent, r_ent, atol=1e-5, rtol=1e-5)
    assert jnp.allclose(value, r_val, atol=1e-5, rtol=1e-5)

    # --- non-divisible batch exercising the grid + padding path ---
    state2 = jax.random.normal(k_state2, (300, STATE_DIM), jnp.float32)
    p2, l2, e2, v2 = actor_critic_forward(state2, packed, ACTION_DIM, tile_b=128)
    jax.block_until_ready((p2, l2, e2, v2))
    rp2, rl2, re2, rv2 = _reference_forward(state2, params)
    assert jnp.allclose(p2, rp2, atol=1e-5, rtol=1e-5)
    assert jnp.allclose(l2, rl2, atol=1e-5, rtol=1e-5)
    assert jnp.allclose(e2, re2, atol=1e-5, rtol=1e-5)
    assert jnp.allclose(v2, rv2, atol=1e-5, rtol=1e-5)

    # act() path (Categorical sampling in JAX glue)
    action, action_logprob, state_val = act(state, packed, ACTION_DIM, k_sample)
    jax.block_until_ready((action, action_logprob, state_val))

    # evaluate() path
    alp, sv, de = evaluate(state, action, packed, ACTION_DIM)
    jax.block_until_ready((alp, sv, de))

    print("KERNEL_OK")
</pallas_src>

<mosaic_0001>
module attributes {stable_mosaic.version = 11 : i64} {
  func.func @_fused_actor_critic_kernel(%arg0: i32, %arg1: memref<8x128xf32, #tpu.memory_space<vmem>>, %arg2: memref<128x128xf32, #tpu.memory_space<vmem>>, %arg3: memref<1x128xf32, #tpu.memory_space<vmem>>, %arg4: memref<128x128xf32, #tpu.memory_space<vmem>>, %arg5: memref<1x128xf32, #tpu.memory_space<vmem>>, %arg6: memref<128x128xf32, #tpu.memory_space<vmem>>, %arg7: memref<1x128xf32, #tpu.memory_space<vmem>>, %arg8: memref<8x128xf32, #tpu.memory_space<vmem>>, %arg9: memref<8x128xf32, #tpu.memory_space<vmem>>) attributes {dimension_semantics = [#tpu.dimension_semantics<parallel>], iteration_bounds = array<i64: 1>, scalar_prefetch = 0 : i64, scratch_operands = 0 : i64, tpu.core_type = #tpu.core_type<tc>, window_params = [{transform_indices = @transform_0, window_bounds = array<i64: 8, 128>}, {pipeline_mode = #tpu.pipeline_mode<synchronous>, transform_indices = @transform_1, window_bounds = array<i64: 128, 128>}, {pipeline_mode = #tpu.pipeline_mode<synchronous>, transform_indices = @transform_2, window_bounds = array<i64: 1, 128>}, {pipeline_mode = #tpu.pipeline_mode<synchronous>, transform_indices = @transform_3, window_bounds = array<i64: 128, 128>}, {pipeline_mode = #tpu.pipeline_mode<synchronous>, transform_indices = @transform_4, window_bounds = array<i64: 1, 128>}, {pipeline_mode = #tpu.pipeline_mode<synchronous>, transform_indices = @transform_5, window_bounds = array<i64: 128, 128>}, {pipeline_mode = #tpu.pipeline_mode<synchronous>, transform_indices = @transform_6, window_bounds = array<i64: 1, 128>}, {transform_indices = @transform_7, window_bounds = array<i64: 8, 128>}, {transform_indices = @transform_8, window_bounds = array<i64: 8, 128>}]} {
    %c0 = arith.constant 0 : index
    %c0_0 = arith.constant 0 : index
    %0 = vector.load %arg1[%c0, %c0_0] : memref<8x128xf32, #tpu.memory_space<vmem>>, vector<8x128xf32>
    %c0_1 = arith.constant 0 : index
    %c0_2 = arith.constant 0 : index
    %1 = vector.load %arg2[%c0_1, %c0_2] : memref<128x128xf32, #tpu.memory_space<vmem>>, vector<128x128xf32>
    %cst = arith.constant dense<0.000000e+00> : vector<8x128xf32>
    %2 = tpu.matmul %0, %1, %cst {dimension_numbers = #tpu.dot_dimension_numbers<[1], [0], [0], [1], [0, 0, 1, 1], [], []>} : vector<8x128xf32>, vector<128x128xf32>, vector<8x128xf32> -> vector<8x128xf32>
    %c0_3 = arith.constant 0 : index
    %c0_4 = arith.constant 0 : index
    %3 = vector.load %arg3[%c0_3, %c0_4] : memref<1x128xf32, #tpu.memory_space<vmem>>, vector<1x128xf32>
    %4 = vector.broadcast %3 : vector<1x128xf32> to vector<8x128xf32>
    %5 = arith.addf %2, %4 : vector<8x128xf32>
    %6 = math.tanh %5 : vector<8x128xf32>
    %c0_5 = arith.constant 0 : index
    %c0_6 = arith.constant 0 : index
    %7 = vector.load %arg4[%c0_5, %c0_6] : memref<128x128xf32, #tpu.memory_space<vmem>>, vector<128x128xf32>
    %cst_7 = arith.constant dense<0.000000e+00> : vector<8x128xf32>
    %8 = tpu.matmul %6, %7, %cst_7 {dimension_numbers = #tpu.dot_dimension_numbers<[1], [0], [0], [1], [0, 0, 1, 1], [], []>} : vector<8x128xf32>, vector<128x128xf32>, vector<8x128xf32> -> vector<8x128xf32>
    %c0_8 = arith.constant 0 : index
    %c0_9 = arith.constant 0 : index
    %9 = vector.load %arg5[%c0_8, %c0_9] : memref<1x128xf32, #tpu.memory_space<vmem>>, vector<1x128xf32>
    %10 = vector.broadcast %9 : vector<1x128xf32> to vector<8x128xf32>
    %11 = arith.addf %8, %10 : vector<8x128xf32>
    %12 = math.tanh %11 : vector<8x128xf32>
    %c0_10 = arith.constant 0 : index
    %c0_11 = arith.constant 0 : index
    %13 = vector.load %arg6[%c0_10, %c0_11] : memref<128x128xf32, #tpu.memory_space<vmem>>, vector<128x128xf32>
    %cst_12 = arith.constant dense<0.000000e+00> : vector<8x128xf32>
    %14 = tpu.matmul %12, %13, %cst_12 {dimension_numbers = #tpu.dot_dimension_numbers<[1], [0], [0], [1], [0, 0, 1, 1], [], []>} : vector<8x128xf32>, vector<128x128xf32>, vector<8x128xf32> -> vector<8x128xf32>
    %c0_13 = arith.constant 0 : index
    %c0_14 = arith.constant 0 : index
    %15 = vector.load %arg7[%c0_13, %c0_14] : memref<1x128xf32, #tpu.memory_space<vmem>>, vector<1x128xf32>
    %16 = vector.broadcast %15 : vector<1x128xf32> to vector<8x128xf32>
    %17 = arith.addf %14, %16 : vector<8x128xf32>
    %18 = tpu.iota {dimensions = array<i32: 1>} : vector<8x128xi32>
    %c6_i32 = arith.constant 6 : i32
    %19 = vector.broadcast %c6_i32 : i32 to vector<8x128xi32>
    %20 = arith.cmpi slt, %18, %19 : vector<8x128xi32>
    %cst_15 = arith.constant 0xFF800000 : f32
    %21 = vector.broadcast %cst_15 : f32 to vector<8x128xf32>
    %22 = arith.select %20, %17, %21 : vector<8x128xi1>, vector<8x128xf32>
    %cst_16 = arith.constant dense<0xFF800000> : vector<8xf32>
    %23 = vector.multi_reduction <maximumf>, %22, %cst_16 [1] : vector<8x128xf32> to vector<8xf32>
    %24 = vector.shape_cast %23 : vector<8xf32> to vector<8x1xf32>
    %25 = vector.broadcast %24 : vector<8x1xf32> to vector<8x128xf32>
    %26 = arith.subf %17, %25 : vector<8x128xf32>
    %27 = math.exp %26 : vector<8x128xf32>
    %cst_17 = arith.constant 0.000000e+00 : f32
    %28 = vector.broadcast %cst_17 : f32 to vector<8x128xf32>
    %29 = arith.select %20, %27, %28 : vector<8x128xi1>, vector<8x128xf32>
    %cst_18 = arith.constant dense<0.000000e+00> : vector<8xf32>
    %30 = vector.multi_reduction <add>, %29, %cst_18 [1] : vector<8x128xf32> to vector<8xf32>
    %31 = vector.shape_cast %30 : vector<8xf32> to vector<8x1xf32>
    %32 = tpu.reciprocal %31 : vector<8x1xf32> -> vector<8x1xf32>
    %33 = vector.broadcast %32 : vector<8x1xf32> to vector<8x128xf32>
    %34 = arith.mulf %29, %33 : vector<8x128xf32>
    %35 = vector.broadcast %24 : vector<8x1xf32> to vector<8x128xf32>
    %36 = arith.subf %17, %35 : vector<8x128xf32>
    %37 = math.log %31 : vector<8x1xf32>
    %38 = vector.broadcast %37 : vector<8x1xf32> to vector<8x128xf32>
    %39 = arith.subf %36, %38 : vector<8x128xf32>
    %cst_19 = arith.constant 0.000000e+00 : f32
    %40 = vector.broadcast %cst_19 : f32 to vector<8x128xf32>
    %41 = arith.select %20, %39, %40 : vector<8x128xi1>, vector<8x128xf32>
    %42 = arith.mulf %34, %41 : vector<8x128xf32>
    %cst_20 = arith.constant dense<0.000000e+00> : vector<8xf32>
    %43 = vector.multi_reduction <add>, %42, %cst_20 [1] : vector<8x128xf32> to vector<8xf32>
    %44 = vector.shape_cast %43 : vector<8xf32> to vector<8x1xf32>
    %cst_21 = arith.constant 0.000000e+00 : f32
    %45 = vector.broadcast %cst_21 : f32 to vector<8x1xf32>
    %46 = arith.subf %45, %44 : vector<8x1xf32>
    %c127_i32 = arith.constant 127 : i32
    %47 = vector.broadcast %c127_i32 : i32 to vector<8x128xi32>
    %48 = arith.cmpi eq, %18, %47 : vector<8x128xi32>
    %c126_i32 = arith.constant 126 : i32
    %49 = vector.broadcast %c126_i32 : i32 to vector<8x128xi32>
    %50 = arith.cmpi eq, %18, %49 : vector<8x128xi32>
    %51 = vector.shape_cast %46 : vector<8x1xf32> to vector<8x1xf32>
    %52 = vector.broadcast %51 : vector<8x1xf32> to vector<8x128xf32>
    %53 = arith.select %50, %52, %34 : vector<8x128xi1>, vector<8x128xf32>
    %54 = arith.select %48, %17, %53 : vector<8x128xi1>, vector<8x128xf32>
    %c0_22 = arith.constant 0 : index
    %c0_23 = arith.constant 0 : index
    %55 = vector.load %arg8[%c0_22, %c0_23] : memref<8x128xf32, #tpu.memory_space<vmem>>, vector<8x128xf32>
    tpu.vector_store %arg8[%c0_22, %c0_23], %54 {strides = array<i32>} : memref<8x128xf32, #tpu.memory_space<vmem>>, vector<8x128xf32>,
    %c0_24 = arith.constant 0 : index
    %c0_25 = arith.constant 0 : index
    %56 = vector.load %arg9[%c0_24, %c0_25] : memref<8x128xf32, #tpu.memory_space<vmem>>, vector<8x128xf32>
    tpu.vector_store %arg9[%c0_24, %c0_25], %41 {strides = array<i32>} : memref<8x128xf32, #tpu.memory_space<vmem>>, vector<8x128xf32>,
    return
  }
  func.func @transform_0(%arg0: i32) -> (i32, i32) {
    %c0_i32 = arith.constant 0 : i32
    %c0_i32_0 = arith.constant 0 : i32
    return %arg0, %c0_i32 : i32, i32
  }
  func.func @transform_1(%arg0: i32) -> (i32, i32) {
    %c0_i32 = arith.constant 0 : i32
    %c0_i32_0 = arith.constant 0 : i32
    %c0_i32_1 = arith.constant 0 : i32
    return %c0_i32, %c0_i32_0 : i32, i32
  }
  func.func @transform_2(%arg0: i32) -> (i32, i32) {
    %c0_i32 = arith.constant 0 : i32
    %c0_i32_0 = arith.constant 0 : i32
    %c0_i32_1 = arith.constant 0 : i32
    return %c0_i32, %c0_i32_0 : i32, i32
  }
  func.func @transform_3(%arg0: i32) -> (i32, i32) {
    %c0_i32 = arith.constant 0 : i32
    %c0_i32_0 = arith.constant 0 : i32
    %c0_i32_1 = arith.constant 0 : i32
    return %c0_i32, %c0_i32_0 : i32, i32
  }
  func.func @transform_4(%arg0: i32) -> (i32, i32) {
    %c0_i32 = arith.constant 0 : i32
    %c0_i32_0 = arith.constant 0 : i32
    %c0_i32_1 = arith.constant 0 : i32
    return %c0_i32, %c0_i32_0 : i32, i32
  }
  func.func @transform_5(%arg0: i32) -> (i32, i32) {
    %c0_i32 = arith.constant 0 : i32
    %c0_i32_0 = arith.constant 0 : i32
    %c0_i32_1 = arith.constant 0 : i32
    return %c0_i32, %c0_i32_0 : i32, i32
  }
  func.func @transform_6(%arg0: i32) -> (i32, i32) {
    %c0_i32 = arith.constant 0 : i32
    %c0_i32_0 = arith.constant 0 : i32
    %c0_i32_1 = arith.constant 0 : i32
    return %c0_i32, %c0_i32_0 : i32, i32
  }
  func.func @transform_7(%arg0: i32) -> (i32, i32) {
    %c0_i32 = arith.constant 0 : i32
    %c0_i32_0 = arith.constant 0 : i32
    return %arg0, %c0_i32 : i32, i32
  }
  func.func @transform_8(%arg0: i32) -> (i32, i32) {
    %c0_i32 = arith.constant 0 : i32
    %c0_i32_0 = arith.constant 0 : i32
    return %arg0, %c0_i32 : i32, i32
  }
}

</mosaic_0001>

<bundles_post_ra>
// kernel: tpu_custom_call.1
= control target key start
LH: loop header
LB: loop body
LE: loop exit
PB: predicated region body
PF: predicated region fallthrough
CT: control target
= control target key end

     0   :  { %14 = vsyncpa [#allocation3], 0  ;;  %s997_s0 = inlined_call_operand.hbm [shape: f32[8,128], index: 0, kind: input, shape index: {}]   ;;  %s998_s1 = inlined_call_operand.hbm [shape: f32[128,128], index: 1, kind: input, shape index: {}]   ;;  %s999_s2 = inlined_call_operand.vmem [shape: f32[1,128], index: 2, kind: input, shape index: {}]   ;;  %s1000_s3 = inlined_call_operand.hbm [shape: f32[128,128], index: 3, kind: input, shape index: {}]   ;;  %s1001_s4 = inlined_call_operand.vmem [shape: f32[1,128], index: 4, kind: input, shape index: {}]   ;;  %s1002_s5 = inlined_call_operand.hbm [shape: f32[128,128], index: 5, kind: input, shape index: {}]   ;;  %s1003_s6 = inlined_call_operand.vmem [shape: f32[1,128], index: 6, kind: input, shape index: {}]   ;;  %s1004_s7 = inlined_call_operand.hbm [shape: f32[8,128], index: 7, kind: output, shape index: {0}]   ;;  %s1005_s8 = inlined_call_operand.hbm [shape: f32[8,128], index: 8, kind: output, shape index: {1}]  }
   0x1   :  { %15 = vsyncpa [#allocation6], 0 }
   0x2   :  { %16 = vsyncpa [#allocation9], 0 }
   0x3   :  { %17 = vsyncpa [#allocation4], 0 }
   0x4   :  { %18 = vsyncpa [#allocation12], 0  ;;  %s818_s27 = smov [#allocation5]   ;;  %s676_s9 = scalar_lea.hbm %s998_s1, 2048 }
   0x5   :  { %s34_s28 = sshll.u32 %s818_s27, 4  ;;  %p677_p0 = scmp.ne.s32.totalorder %s998_s1, %s676_s9  ;;  %s35_s28 = int_to_ptr.vmem [resolvable:$true] %s34_s28 }
   0x6   :  { %p680_p1 = scmp.lt.u32.totalorder %s676_s9, %s998_s1 }
   0x8   :  { %p682_p2 = pnand %p680_p1, %p677_p0 }
   0xa   :  { %685 = shalt.err (!%p682_p2)
}
   0xb   :  { %s686_s14 = scalar_lea.vmem %s35_s28, 2048  ;;  %p691_p4 = scmp.lt.s32.totalorder %s35_s28, %s35_s28 }
   0xc   :  { %p687_p3 = scmp.ne.s32.totalorder %s35_s28, %s686_s14  ;;  %p692_p5 = scmp.lt.s32.totalorder %s686_s14, %s686_s14 }
   0xe   :  { %p693_p6 = por %p692_p5, %p691_p4 }
  0x10   :  { %p694_p7 = pnand %p693_p6, %p687_p3 }
  0x12   :  { %697 = shalt.err (!%p694_p7)
}
  0x13   :  { %s819_s15 = smov 128   ;;  %s820_s16 = smov 8  }
  0x14   :  { %40 = dma.hbm_to_vmem [thread:$0]  %s998_s1, 2048, %s35_s28, [#allocation6], %s819_s15, %s819_s15, %s820_s16  }
  0x15   :  { %s821_s19 = smov [#allocation2]   ;;  %s822_s21 = smov [#allocation7]  }
  0x16   :  { %s25_s20 = sshll.u32 %s821_s19, 4  ;;  %s48_s22 = sshll.u32 %s822_s21, 4  ;;  %s26_s20 = int_to_ptr.vmem [resolvable:$true] %s25_s20  ;;  %s49_s22 = int_to_ptr.vmem [resolvable:$true] %s48_s22 }
  0x17   :  { %s698_s25 = scalar_lea.hbm %s997_s0, 128 }
  0x18   :  { %p699_p8 = scmp.ne.s32.totalorder %s997_s0, %s698_s25  ;;  %p702_p9 = scmp.lt.u32.totalorder %s698_s25, %s997_s0 }
  0x1a   :  { %p704_p10 = pnand %p702_p9, %p699_p8 }
  0x1c   :  { %707 = shalt.err (!%p704_p10)
}
  0x1d   :  { %s708_s1 = scalar_lea.vmem %s26_s20, 128  ;;  %p713_p12 = scmp.lt.s32.totalorder %s26_s20, %s26_s20 }
  0x1e   :  { %p709_p11 = scmp.ne.s32.totalorder %s26_s20, %s708_s1  ;;  %p714_p13 = scmp.lt.s32.totalorder %s708_s1, %s708_s1 }
  0x20   :  { %p715_p0 = por %p714_p13, %p713_p12 }
  0x22   :  { %p716_p1 = pnand %p715_p0, %p709_p11 }
  0x24   :  { %719 = shalt.err (!%p716_p1)
}
  0x25   :  { %28 = dma.hbm_to_vmem [thread:$0]  %s997_s0, 128, %s26_s20, [#allocation3]  }
  0x26   :  { %s720_s12 = scalar_lea.hbm %s1000_s3, 2048 }
  0x27   :  { %p721_p2 = scmp.ne.s32.totalorder %s1000_s3, %s720_s12  ;;  %p724_p3 = scmp.lt.u32.totalorder %s720_s12, %s1000_s3 }
  0x29   :  { %p726_p4 = pnand %p724_p3, %p721_p2 }
  0x2b   :  { %729 = shalt.err (!%p726_p4)
}
  0x2c   :  { %s730_s19 = scalar_lea.vmem %s49_s22, 2048  ;;  %p735_p6 = scmp.lt.s32.totalorder %s49_s22, %s49_s22 }
  0x2d   :  { %p731_p5 = scmp.ne.s32.totalorder %s49_s22, %s730_s19  ;;  %p736_p7 = scmp.lt.s32.totalorder %s730_s19, %s730_s19 }
  0x2f   :  { %p737_p8 = por %p736_p7, %p735_p6 }
  0x31   :  { %p738_p9 = pnand %p737_p8, %p731_p5 }
  0x33   :  { %741 = shalt.err (!%p738_p9)
}
  0x34   :  { %54 = dma.hbm_to_vmem [thread:$0]  %s1000_s3, 2048, %s49_s22, [#allocation6], %s819_s15, %s819_s15, %s820_s16  }
  0x35   :  { %s823_s21 = smov [#allocation8]   ;;  %s742_s26 = scalar_lea.hbm %s1002_s5, 2048 }
  0x36   :  { %s62_s23 = sshll.u32 %s823_s21, 4  ;;  %p743_p10 = scmp.ne.s32.totalorder %s1002_s5, %s742_s26  ;;  %s63_s23 = int_to_ptr.vmem [resolvable:$true] %s62_s23 }
  0x37   :  { %p746_p11 = scmp.lt.u32.totalorder %s742_s26, %s1002_s5 }
  0x39   :  { %p748_p12 = pnand %p746_p11, %p743_p10 }
  0x3b   :  { %751 = shalt.err (!%p748_p12)
}
  0x3c   :  { %s752_s28 = scalar_lea.vmem %s63_s23, 2048  ;;  %p757_p0 = scmp.lt.s32.totalorder %s63_s23, %s63_s23 }
  0x3d   :  { %p753_p13 = scmp.ne.s32.totalorder %s63_s23, %s752_s28  ;;  %p758_p1 = scmp.lt.s32.totalorder %s752_s28, %s752_s28 }
  0x3f   :  { %p759_p2 = por %p758_p1, %p757_p0 }
  0x41   :  { %p760_p3 = pnand %p759_p2, %p753_p13 }
  0x43   :  { %763 = shalt.err (!%p760_p3)
}
  0x44   :  { %68 = dma.hbm_to_vmem [thread:$0]  %s1002_s5, 2048, %s63_s23, [#allocation9], %s819_s15, %s819_s15, %s820_s16  }
  0x45   :  { %808 = dma.done.wait [#allocation3], 128  }
  0x46   :  { %809 = vsyncadd [#allocation3], 4294967168 }
  0x47   :  { %810 = dma.done.wait [#allocation6], 4096  }
  0x48   :  { %811 = vsyncadd [#allocation6], 4294963200 }
  0x49   :  { %812 = dma.done.wait [#allocation9], 2048  }
  0x4a   :  { %813 = vsyncadd [#allocation9], 4294965248  ;;  %v824_v0 = vmov 0.0|0.0   ;;  %vm825_vm0 = vmmov 0   ;;  %v826_v1 = vmov 0.0   ;;  %v84_v2 = vld [vmem:[#allocation5] sm:$0xff] }
  0x4b   :  { %583 = vmatprep.subr.bf16.mxu0 %v824_v0  ;;  %510 = vmatprep.mubr.msk.f32.mxu0 %vm825_vm0, %v826_v1  ;;  %v85_v3 = vld [vmem:[#allocation5 + $0x8] sm:$0xff]  ;;  %v86_v4 = vld [vmem:[#allocation5 + $0x10] sm:$0xff]  ;;  %v87_v6 = vld [vmem:[#allocation5 + $0x18] sm:$0xff] }
  0x4c   :  { %607 = vmatprep.subr.bf16.mxu1 %v824_v0  ;;  %545 = vmatprep.mubr.msk.f32.mxu1 %vm825_vm0, %v826_v1  ;;  %v584_v5 = vpack.c.bf16 %v85_v3, %v84_v2  ;;  %v587_v7 = vpack.c.bf16 %v87_v6, %v86_v4  ;;  %v88_v8 = vld [vmem:[#allocation5 + $0x20] sm:$0xff]  ;;  %v89_v9 = vld [vmem:[#allocation5 + $0x28] sm:$0xff]  ;;  %v180_v12 = vld [vmem:[#allocation7 + $0x10] sm:$0xff] }
  0x4d   :  { %v178_v10 = vld [vmem:[#allocation7] sm:$0xff]  ;;  %v179_v11 = vld [vmem:[#allocation7 + $0x8] sm:$0xff]  ;;  %v181_v13 = vld [vmem:[#allocation7 + $0x18] sm:$0xff]  ;;  %v590_v14 = vpack.c.bf16 %v89_v9, %v88_v8 }
  0x4e   :  { %585 = vmatpush3.bf16.msra.mxu0 %v584_v5  ;;  %v608_v15 = vpack.c.bf16 %v179_v11, %v178_v10  ;;  %v90_v16 = vld [vmem:[#allocation5 + $0x30] sm:$0xff]  ;;  %v91_v17 = vld [vmem:[#allocation5 + $0x38] sm:$0xff]  ;;  %v611_v18 = vpack.c.bf16 %v181_v13, %v180_v12  ;;  %v182_v19 = vld [vmem:[#allocation7 + $0x20] sm:$0xff] }
  0x4f   :  { %586 = vmatprep.subr.bf16.mxu0 %v824_v0  ;;  %v183_v20 = vld [vmem:[#allocation7 + $0x28] sm:$0xff]  ;;  %v593_v21 = vpack.c.bf16 %v91_v17, %v90_v16  ;;  %v92_v22 = vld [vmem:[#allocation5 + $0x40] sm:$0xff]  ;;  %v184_v25 = vld [vmem:[#allocation7 + $0x30] sm:$0xff] }
  0x50   :  { %609 = vmatpush3.bf16.msra.mxu1 %v608_v15  ;;  %v93_v23 = vld [vmem:[#allocation5 + $0x48] sm:$0xff]  ;;  %v614_v24 = vpack.c.bf16 %v183_v20, %v182_v19  ;;  %v185_v26 = vld [vmem:[#allocation7 + $0x38] sm:$0xff]  ;;  %v94_v28 = vld [vmem:[#allocation5 + $0x50] sm:$0xff] }
  0x51   :  { %610 = vmatprep.subr.bf16.mxu1 %v824_v0  ;;  %v596_v27 = vpack.c.bf16 %v93_v23, %v92_v22  ;;  %v95_v29 = vld [vmem:[#allocation5 + $0x58] sm:$0xff]  ;;  %v617_v30 = vpack.c.bf16 %v185_v26, %v184_v25  ;;  %v186_v31 = vld [vmem:[#allocation7 + $0x40] sm:$0xff]  ;;  %v187_v32 = vld [vmem:[#allocation7 + $0x48] sm:$0xff]  ;;  %v365_v22 = vlaneseq }
  0x52   :  { %588 = vmatpush3.bf16.msra.mxu0 %v587_v7  ;;  %v599_v33 = vpack.c.bf16 %v95_v29, %v94_v28  ;;  %v96_v34 = vld [vmem:[#allocation5 + $0x60] sm:$0xff]  ;;  %v97_v35 = vld [vmem:[#allocation5 + $0x68] sm:$0xff]  ;;  %v620_v36 = vpack.c.bf16 %v187_v32, %v186_v31  ;;  %v98_v38 = vld [vmem:[#allocation5 + $0x70] sm:$0xff] }
  0x53   :  { %589 = vmatprep.subr.bf16.mxu0 %v824_v0  ;;  %v602_v37 = vpack.c.bf16 %v97_v35, %v96_v34  ;;  %v99_v39 = vld [vmem:[#allocation5 + $0x78] sm:$0xff]  ;;  %v188_v42 = vld [vmem:[#allocation7 + $0x50] sm:$0xff]  ;;  %v190_v45 = vld [vmem:[#allocation7 + $0x60] sm:$0xff]  ;;  %v366_v23 = vand.u32 127, %v365_v22 }
  0x54   :  { %612 = vmatpush3.bf16.msra.mxu1 %v611_v18  ;;  %v605_v40 = vpack.c.bf16 %v99_v39, %v98_v38  ;;  %v83_v41 = vld [vmem:[#allocation2] sm:$0xff]  ;;  %v191_v46 = vld [vmem:[#allocation7 + $0x68] sm:$0xff]  ;;  %v192_v48 = vld [vmem:[#allocation7 + $0x70] sm:$0xff] }
  0x55   :  { %613 = vmatprep.subr.bf16.mxu1 %v824_v0  ;;  %v189_v43 = vld [vmem:[#allocation7 + $0x58] sm:$0xff]  ;;  %v626_v47 = vpack.c.bf16 %v191_v46, %v190_v45  ;;  %v272_v51 = vld [vmem:[#allocation8] sm:$0xff]  ;;  %v273_v52 = vld [vmem:[#allocation8 + $0x8] sm:$0xff]  ;;  %vm367_vm1 = vcmp.lt.s32.totalorder %v366_v23, 6 }
  0x56   :  { %591 = vmatpush3.bf16.msra.mxu0 %v590_v14  ;;  %v623_v44 = vpack.c.bf16 %v189_v43, %v188_v42  ;;  %v193_v49 = vld [vmem:[#allocation7 + $0x78] sm:$0xff]  ;;  %v274_v53 = vld [vmem:[#allocation8 + $0x10] sm:$0xff]  ;;  %v632_v54 = vpack.c.bf16 %v273_v52, %v272_v51  ;;  %v276_v57 = vld [vmem:[#allocation8 + $0x20] sm:$0xff] }
  0x57   :  { %592 = vmatprep.subr.bf16.mxu0 %v824_v0  ;;  %v629_v50 = vpack.c.bf16 %v193_v49, %v192_v48  ;;  %v275_v55 = vld [vmem:[#allocation8 + $0x18] sm:$0xff]  ;;  %v277_v58 = vld [vmem:[#allocation8 + $0x28] sm:$0xff]  ;;  %v278_v60 = vld [vmem:[#allocation8 + $0x30] sm:$0xff] }
  0x58   :  { %615 = vmatpush3.bf16.msra.mxu1 %v614_v24  ;;  %v635_v56 = vpack.c.bf16 %v275_v55, %v274_v53  ;;  %v638_v59 = vpack.c.bf16 %v277_v58, %v276_v57  ;;  %v279_v61 = vld [vmem:[#allocation8 + $0x38] sm:$0xff]  ;;  %v280_v63 = vld [vmem:[#allocation8 + $0x40] sm:$0xff]  ;;  %v282_v8 = vld [vmem:[#allocation8 + $0x50] sm:$0xff] }
  0x59   :  { %616 = vmatprep.subr.bf16.mxu1 %v824_v0  ;;  %v641_v62 = vpack.c.bf16 %v279_v61, %v278_v60  ;;  %v424_v3 = vld [vmem:[%s999_s2] ss:$0 sm:$0xff]  ;;  %v284_v11 = vld [vmem:[#allocation8 + $0x60] sm:$0xff]  ;;  %v285_v12 = vld [vmem:[#allocation8 + $0x68] sm:$0xff] }
  0x5a   :  { %594 = vmatpush3.bf16.msra.mxu0 %v593_v21  ;;  %v283_v9 = vld [vmem:[#allocation8 + $0x58] sm:$0xff]  ;;  %v650_v13 = vpack.c.bf16 %v285_v12, %v284_v11  ;;  %v286_v14 = vld [vmem:[#allocation8 + $0x70] sm:$0xff] }
  0x5b   :  { %595 = vmatprep.subr.bf16.mxu0 %v824_v0  ;;  %v647_v10 = vpack.c.bf16 %v283_v9, %v282_v8  ;;  %v287_v15 = vld [vmem:[#allocation8 + $0x78] sm:$0xff] }
  0x5c   :  { %618 = vmatpush3.bf16.msra.mxu1 %v617_v30  ;;  %v653_v16 = vpack.c.bf16 %v287_v15, %v286_v14  ;;  %v425_v17 = vld [vmem:[%s1001_s4] ss:$0 sm:$0xff]  ;;  %s827_s4 = smov [#allocation11]  }
  0x5d   :  { %619 = vmatprep.subr.bf16.mxu1 %v824_v0  ;;  %v426_v24 = vld [vmem:[%s1003_s6] ss:$0 sm:$0xff]  ;;  %s409_s6 = sshll.u32 %s827_s4, 4  ;;  %s410_s6 = int_to_ptr.vmem [resolvable:$true] %s409_s6 }
  0x5e   :  { %597 = vmatpush3.bf16.msra.mxu0 %v596_v27  ;;  %s764_s11 = scalar_lea.vmem %s410_s6, 128  ;;  %p769_p5 = scmp.lt.s32.totalorder %s410_s6, %s410_s6 }
  0x5f   :  { %598 = vmatprep.subr.bf16.mxu0 %v824_v0  ;;  %p765_p4 = scmp.ne.s32.totalorder %s410_s6, %s764_s11  ;;  %p770_p6 = scmp.lt.s32.totalorder %s764_s11, %s764_s11 }
  0x60   :  { %621 = vmatpush3.bf16.msra.mxu1 %v620_v36 }
  0x61   :  { %622 = vmatprep.subr.bf16.mxu1 %v824_v0  ;;  %p771_p7 = por %p770_p6, %p769_p5 }
  0x62   :  { %600 = vmatpush3.bf16.msra.mxu0 %v599_v33 }
  0x63   :  { %601 = vmatprep.subr.bf16.mxu0 %v824_v0  ;;  %p772_p8 = pnand %p771_p7, %p765_p4 }
  0x64   :  { %624 = vmatpush3.bf16.msra.mxu1 %v623_v44 }
  0x65   :  { %625 = vmatprep.subr.bf16.mxu1 %v824_v0 }
  0x66   :  { %603 = vmatpush3.bf16.msra.mxu0 %v602_v37 }
  0x67   :  { %604 = vmatprep.subr.bf16.mxu0 %v824_v0 }
  0x68   :  { %627 = vmatpush3.bf16.msra.mxu1 %v626_v47 }
  0x69   :  { %628 = vmatprep.subr.bf16.mxu1 %v824_v0 }
  0x6a   :  { %606 = vmatpush3.bf16.msra.mxu0 %v605_v40 }
  0x6b   :  { %631 = vmatprep.subr.bf16.mxu0 %v824_v0 }
  0x6c   :  { %630 = vmatpush3.bf16.msra.mxu1 %v629_v50 }
  0x6d   :  { %511 = vmatmul.mubr.f32.vlgmr.msra.gmra.mrb[0].mxu0 %v83_v41 }
  0x6e   :  { %580 = vmatprep.mubr.msk.f32.mxu0 %vm825_vm0, %v826_v1  ;;  %633 = vmatpush3.bf16.msra.mxu0 %v632_v54  ;;  %v281_v1 = vld [vmem:[#allocation8 + $0x48] sm:$0xff] }
  0x6f   :  { %634 = vmatprep.subr.bf16.mxu0 %v824_v0  ;;  %v644_v2 = vpack.c.bf16 %v281_v1, %v280_v63 }
  0x72   :  { %636 = vmatpush3.bf16.msra.mxu0 %v635_v56 }
  0x73   :  { %637 = vmatprep.subr.bf16.mxu0 %v824_v0 }
  0x76   :  { %639 = vmatpush3.bf16.msra.mxu0 %v638_v59 }
  0x77   :  { %640 = vmatprep.subr.bf16.mxu0 %v824_v0 }
  0x7a   :  { %642 = vmatpush3.bf16.msra.mxu0 %v641_v62 }
  0x7b   :  { %643 = vmatprep.subr.bf16.mxu0 %v824_v0 }
  0x7e   :  { %645 = vmatpush3.bf16.msra.mxu0 %v644_v2 }
  0x7f   :  { %646 = vmatprep.subr.bf16.mxu0 %v824_v0 }
  0x82   :  { %648 = vmatpush3.bf16.msra.mxu0 %v647_v10 }
  0x83   :  { %649 = vmatprep.subr.bf16.mxu0 %v824_v0 }
  0x86   :  { %651 = vmatpush3.bf16.msra.mxu0 %v650_v13 }
  0x87   :  { %652 = vmatprep.subr.bf16.mxu0 %v824_v0 }
  0x8a   :  { %654 = vmatpush3.bf16.msra.mxu0 %v653_v16 }
 0x140   :  { %v173_v4 = vpop.f32.mrb[0].mxu0 }
 0x141   :  { %v174_v5 = vadd.f32 %v424_v3, %v173_v4  ;;  %v512_v6 = vpop.f32.mrb[1].mxu0 }
 0x143   :  { %666 = vtanh.f32 %v174_v5 }
 0x14d   :  { %v667_v7 = vpop.eup %666 }
 0x14e   :  { %546 = vmatmul.mubr.f32.vlgmr.msra.gmra.mrb[0].mxu1 %v667_v7 }
 0x221   :  { %v267_v18 = vpop.f32.mrb[0].mxu1 }
 0x222   :  { %v268_v19 = vadd.f32 %v425_v17, %v267_v18  ;;  %v547_v20 = vpop.f32.mrb[1].mxu1 }
 0x224   :  { %668 = vtanh.f32 %v268_v19 }
 0x22e   :  { %v669_v21 = vpop.eup %668 }
 0x22f   :  { %581 = vmatmul.mubr.f32.vlgmr.msra.gmra.mrb[2].mxu0 %v669_v21 }
 0x302   :  { %v361_v25 = vpop.f32.mrb[2].mxu0 }
 0x303   :  { %v362_v0 = vadd.f32 %v426_v24, %v361_v25  ;;  %v582_v26 = vpop.f32.mrb[3].mxu0 }
 0x305   :  { %v368_v27 = vsel %vm367_vm1, %v362_v0, -inf }
 0x306   :  { %369 = vmax.xlane.f32.xlu0 %v368_v27 }
 0x393   :  { %v370_v28 = vpop.xlane.xlu0 %369 }
 0x394   :  { %v371_v29 = vsub.f32 %v362_v0, %v370_v28 }
 0x396   :  { %v372_v30 = vmul.f32 1.442695, %v371_v29 }
 0x398   :  { %670 = vpow2.f32 %v372_v30 }
 0x3a2   :  { %v671_v31 = vpop.eup %670 }
 0x3a3   :  { %v374_v32 = vsel %vm367_vm1, %v671_v31, 0.0 }
 0x3a4   :  { %375 = vadd.xlane.f32.xlu0 %v374_v32 }
 0x431   :  { %v376_v33 = vpop.xlane.xlu0 %375 }
 0x432   :  { %672 = vlog2.f32 %v376_v33 }
 0x433   :  { %674 = vrcp.f32 %v376_v33 }
 0x43c   :  { %v673_v34 = vpop.eup %672 }
 0x43d   :  { %v675_v35 = vpop.eup %674  ;;  %v380_v36 = vmul.f32 0.6931472, %v673_v34 }
 0x43e   :  { %v378_v38 = vmul.f32 %v675_v35, %v374_v32 }
 0x43f   :  { %v381_v37 = vsub.f32 %v371_v29, %v380_v36 }
 0x441   :  { %v382_v39 = vsel %vm367_vm1, %v381_v37, 0.0 }
 0x442   :  { %v383_v40 = vmul.f32 %v382_v39, %v378_v38  ;;  %392 = vst [vmem:[#allocation11] sm:$0xff] %v382_v39 }
 0x444   :  { %384 = vadd.xlane.f32.xlu1 %v383_v40 }
 0x445   :  { %775 = shalt.err (!%p772_p8)
}
 0x446   :  { %s776_s14 = scalar_lea.hbm %s1005_s8, 128 }
 0x447   :  { %p777_p9 = scmp.ne.s32.totalorder %s1005_s8, %s776_s14  ;;  %p780_p10 = scmp.lt.u32.totalorder %s776_s14, %s1005_s8 }
 0x449   :  { %p782_p11 = pnand %p780_p10, %p777_p9 }
 0x44b   :  { %785 = shalt.err (!%p782_p11)
}
 0x44c   :  { %412 = dma.vmem_to_hbm [thread:$0]  %s410_s6, 128, %s1005_s8, [#allocation12]   ;;  %vm388_vm2 = vcmp.eq.s32.totalorder %v366_v23, 126  ;;  %vm387_vm3 = vcmp.eq.s32.totalorder %v366_v23, 127 }
 0x44d   :  { %s828_s23 = smov [#allocation10]  }
 0x44e   :  { %s399_s24 = sshll.u32 %s828_s23, 4  ;;  %s400_s24 = int_to_ptr.vmem [resolvable:$true] %s399_s24 }
 0x44f   :  { %s786_s25 = scalar_lea.vmem %s400_s24, 128  ;;  %p791_p13 = scmp.lt.s32.totalorder %s400_s24, %s400_s24 }
 0x450   :  { %p787_p12 = scmp.ne.s32.totalorder %s400_s24, %s786_s25  ;;  %p792_p0 = scmp.lt.s32.totalorder %s786_s25, %s786_s25 }
 0x452   :  { %p793_p1 = por %p792_p0, %p791_p13 }
 0x454   :  { %p794_p2 = pnand %p793_p1, %p787_p12 }
 0x4d1   :  { %v385_v41 = vpop.xlane.xlu1 %384 }
 0x4d2   :  { %v386_v42 = vsub.f32 0.0, %v385_v41 }
 0x4d4   :  { %v389_v43 = vsel %vm388_vm2, %v386_v42, %v378_v38 }
 0x4d5   :  { %v390_v44 = vsel %vm387_vm3, %v362_v0, %v389_v43 }
 0x4d6   :  { %391 = vst [vmem:[#allocation10] sm:$0xff] %v390_v44 }
 0x4d7   :  { %797 = shalt.err (!%p794_p2)
}
 0x4d8   :  { %s798_s8 = scalar_lea.hbm %s1004_s7, 128 }
 0x4d9   :  { %p799_p3 = scmp.ne.s32.totalorder %s1004_s7, %s798_s8  ;;  %p802_p4 = scmp.lt.u32.totalorder %s798_s8, %s1004_s7 }
 0x4db   :  { %p804_p5 = pnand %p802_p4, %p799_p3 }
 0x4dd   :  { %807 = shalt.err (!%p804_p5)
}
 0x4de   :  { %402 = dma.vmem_to_hbm [thread:$0]  %s400_s24, 128, %s1004_s7, [#allocation4]  }
 0x4df   :  { %814 = dma.done.wait [#allocation4], 128  }
 0x4e0   :  { %815 = vsyncadd [#allocation4], 4294967168 }
 0x4e1   :  { %816 = dma.done.wait [#allocation12], 128  }
 0x4e2   :  { %817 = vsyncadd [#allocation12], 4294967168 }
 0x4e3   :  { %419 = vsyncpa [#allocation3], 1 }
 0x4e4   :  { %420 = vsyncpa [#allocation6], 1 }
 0x4e5   :  { %421 = vsyncpa [#allocation9], 1 }
 0x4e6   :  { %422 = vsyncpa [#allocation4], 1 }
 0x4e7   :  { %423 = vsyncpa [#allocation12], 1 }

</bundles_post_ra>
